<compile_context>
chip_gen: v7x
topology: tpu7x:2x2x1
jax: 0.10.0
libtpu: 0.0.40
codegen_flags: <defaults>
</compile_context>

<pallas_src>
import jax
import jax.numpy as jnp
from jax.experimental import pallas as pl
from jax.experimental.pallas import tpu as pltpu


# --------------------------------------------------------------------------
# Kernel
# --------------------------------------------------------------------------
def _filter_apply_kernel(m_ref, x_ref, o_ref):
    # m_ref: (H, H) real filter operator (same block every grid step -> DMA'd
    #        once, stays resident in VMEM).
    # x_ref: (TB, H, W) slab of images in natural NCHW layout.
    # o_ref: (TB, H, W) output slab, same layout.
    m = m_ref[...]
    tb = x_ref.shape[0]

    def apply_one(b):
        o_ref[b] = jnp.dot(
            m, x_ref[b], preferred_element_type=jnp.float32
        ).astype(o_ref.dtype)

    if tb <= 8:
        # Short static trip count: unroll for LLO scheduling visibility.
        for b in range(tb):
            apply_one(b)
    else:
        def body(b, carry):
            apply_one(b)
            return carry
        jax.lax.fori_loop(0, tb, body, 0)


# --------------------------------------------------------------------------
# Operator construction (plain-JAX glue; hoist via `operator=` when reused)
# --------------------------------------------------------------------------
def make_learnable_filter_params(filter_size: int) -> jnp.ndarray:
    # nn.Parameter(2 * fftfreq(filter_size).abs().view(-1, 1))
    f = jnp.fft.fftfreq(filter_size).astype(jnp.float32)
    return (2.0 * jnp.abs(f)).reshape(filter_size, 1)


def _build_filter_operator(filt: jnp.ndarray, H: int) -> jnp.ndarray:
    """M = Re( IDFT @ diag(filt) @ DFT ), built with real arithmetic only.

    Phase uses 2*pi*((j*k) mod H)/H so angles stay small/accurate.  The
    product is taken in uint32, exact for H <= 65535 (plenty for sinogram
    filter sizes).  Note: the H-length f32 accumulations here and in the MXU
    matmul give absolute error growing ~sqrt(H); loosen tolerances for H in
    the thousands.
    """
    k = jnp.arange(H, dtype=jnp.uint32)
    jk_mod = (k[:, None] * k[None, :]) % jnp.uint32(H)
    ang = (2.0 * jnp.pi / H) * jk_mod.astype(jnp.float32)
    C = jnp.cos(ang)   # symmetric
    S = jnp.sin(ang)   # symmetric
    fC = filt[:, None] * C
    fS = filt[:, None] * S
    # Re( (C + iS)/H @ (fC - i fS) ) = (C @ fC + S @ fS) / H
    return ((C @ fC) + (S @ fS)) / H


# --------------------------------------------------------------------------
# Tiling heuristic
# --------------------------------------------------------------------------
# Explicit scoped-VMEM limit: well under 128 MiB (v5e/v6e) and within the
# recommended <= ~48 MiB ceiling for v7x's 64 MiB per-TensorCore VMEM.
_VMEM_LIMIT_BYTES = 44 * 1024 * 1024
_PIPELINE_HEADROOM_BYTES = 4 * 1024 * 1024
_TARGET_SLAB_BYTES = 4 * 1024 * 1024     # >= ~1-2 MiB DMA slabs hit ~85% of HBM roofline


def _pick_tile_b(bc: int, h: int, w: int, m_bytes: int) -> int:
    elem = h * w * 4                      # bytes of one (H, W) f32 image
    # 2x input + 2x output pipelined tiles must fit next to M.  M is counted
    # TWICE (we leave Pallas's default double-buffering for the constant
    # block; pl.Buffered(1) on its BlockSpec would reclaim one copy) plus
    # headroom for compiler scratch.
    budget = _VMEM_LIMIT_BYTES - 2 * m_bytes - _PIPELINE_HEADROOM_BYTES
    tb_vmem = max(1, budget // (4 * elem))
    tb_slab = max(1, pl.cdiv(_TARGET_SLAB_BYTES, elem))
    tb = min(bc, tb_vmem, tb_slab)
    # Prefer >= 4 grid steps (pipelining; lets v7x spread the parallel axis
    # over both TensorCores) as long as slabs stay >= ~1 MiB.
    tb_4steps = max(1, bc // 4)
    if tb_4steps * elem >= (1 << 20):
        tb = min(tb, tb_4steps)
    return max(1, int(tb))


# --------------------------------------------------------------------------
# Forward
# --------------------------------------------------------------------------
def learnable_filter_forward(x: jnp.ndarray, filt_param: jnp.ndarray,
                             *, use_bf16: bool = False,
                             operator: jnp.ndarray | None = None) -> jnp.ndarray:
    """x: (B, C, H, W) float32; filt_param: (H, 1) float32 (the nn.Parameter)."""
    B, C, H, W = x.shape
    assert filt_param.shape[0] == H, "filter_size must equal H"
    filt = filt_param.reshape(H).astype(jnp.float32)

    # Real H x H operator Re(IDFT @ diag(filter) @ DFT).  O(H^2..H^3) glue —
    # pass a precomputed `operator=` to cache it across calls in inference loops.
    M = _build_filter_operator(filt, H) if operator is None else operator

    BC = B * C
    # Free reshape (collapses contiguous leading dims) — no transpose, no pad,
    # no extra HBM passes.  The kernel reads/writes the natural NCHW layout.
    xr = x.astype(jnp.float32).reshape(BC, H, W)

    if use_bf16:
        # Halves x DMA bytes and uses native bf16 MXU passes where large H
        # makes the kernel compute-bound.  Accumulation stays f32.
        M = M.astype(jnp.bfloat16)
        xr = xr.astype(jnp.bfloat16)

    m_bytes = int(M.size) * M.dtype.itemsize
    TB = _pick_tile_b(BC, H, W, m_bytes)

    in_tile = TB * H * W * xr.dtype.itemsize
    out_tile = TB * H * W * 4
    vmem_need = 2 * in_tile + 2 * out_tile + 2 * m_bytes + _PIPELINE_HEADROOM_BYTES
    # Best effort for extreme H*W (single image larger than the budget):
    # raise the limit to what is actually needed.
    vmem_limit = int(max(_VMEM_LIMIT_BYTES, vmem_need))

    out = pl.pallas_call(
        _filter_apply_kernel,
        out_shape=jax.ShapeDtypeStruct((BC, H, W), jnp.float32),
        grid_spec=pltpu.PrefetchScalarGridSpec(
            num_scalar_prefetch=0,
            grid=(pl.cdiv(BC, TB),),
            in_specs=[
                # Constant operator: same block index every step -> fetched
                # once and kept resident across the grid.
                pl.BlockSpec((H, H), lambda n: (0, 0)),
                # Natural-layout slab of TB images.  Last two block dims span
                # the full (H, W) extents, so no (8,128) divisibility needed
                # and the HBM-side DMA is fully contiguous.
                pl.BlockSpec((TB, H, W), lambda n: (n, 0, 0)),
            ],
            out_specs=pl.BlockSpec((TB, H, W), lambda n: (n, 0, 0)),
        ),
        compiler_params=pltpu.CompilerParams(
            # Independent batch tiles: allows Mosaic to shard this axis across
            # the two TensorCores on v7x.
            dimension_semantics=("parallel",),
            vmem_limit_bytes=vmem_limit,
        ),
    )(M, xr)

    return out.reshape(B, C, H, W)


# --------------------------------------------------------------------------
# Pure-JAX reference + demo
# --------------------------------------------------------------------------
def _reference_forward(x, filt_param):
    # Reference of the PyTorch semantics (FFT along the H axis).
    filt = filt_param.reshape(-1)
    X = jnp.fft.fft(x.astype(jnp.complex64), axis=2)
    Y = X * filt[None, None, :, None]
    return jnp.real(jnp.fft.ifft(Y, axis=2)).astype(jnp.float32)


if __name__ == "__main__":
    key = jax.random.PRNGKey(0)
    B, C, H, W = 2, 4, 16, 16   # filter_size = H = 16
    x = jax.random.normal(key, (B, C, H, W), dtype=jnp.float32)

    filt_param = make_learnable_filter_params(H)  # deterministic ramp init

    fwd = jax.jit(learnable_filter_forward, static_argnames=("use_bf16",))
    y = jax.block_until_ready(fwd(x, filt_param))

    y_ref = _reference_forward(x, filt_param)
    assert y.shape == (B, C, H, W)
    assert jnp.max(jnp.abs(y - y_ref)) < 1e-4

    print("KERNEL_OK")
</pallas_src>

<mosaic_0001>
module attributes {stable_mosaic.version = 11 : i64} {
  func.func @_filter_apply_kernel(%arg0: i32, %arg1: memref<16x16xf32, #tpu.memory_space<vmem>>, %arg2: memref<8x16x16xf32, #tpu.memory_space<vmem>>, %arg3: memref<8x16x16xf32, #tpu.memory_space<vmem>>) attributes {dimension_semantics = [#tpu.dimension_semantics<parallel>], iteration_bounds = array<i64: 1>, scalar_prefetch = 0 : i64, scratch_operands = 0 : i64, tpu.core_type = #tpu.core_type<tc>, window_params = [{pipeline_mode = #tpu.pipeline_mode<synchronous>, transform_indices = @transform_0, window_bounds = array<i64: 16, 16>}, {transform_indices = @transform_1, window_bounds = array<i64: 8, 16, 16>}, {transform_indices = @transform_2, window_bounds = array<i64: 8, 16, 16>}]} {
    %c0 = arith.constant 0 : index
    %c0_0 = arith.constant 0 : index
    %0 = vector.load %arg1[%c0, %c0_0] : memref<16x16xf32, #tpu.memory_space<vmem>>, vector<16x16xf32>
    %c0_1 = arith.constant 0 : index
    %c0_2 = arith.constant 0 : index
    %c0_3 = arith.constant 0 : index
    %1 = vector.load %arg2[%c0_1, %c0_2, %c0_3] : memref<8x16x16xf32, #tpu.memory_space<vmem>>, vector<1x16x16xf32>
    %2 = vector.shape_cast %1 : vector<1x16x16xf32> to vector<16x16xf32>
    %cst = arith.constant dense<0.000000e+00> : vector<16x16xf32>
    %3 = tpu.matmul %0, %2, %cst {dimension_numbers = #tpu.dot_dimension_numbers<[1], [0], [0], [1], [0, 0, 1, 1], [], []>} : vector<16x16xf32>, vector<16x16xf32>, vector<16x16xf32> -> vector<16x16xf32>
    %c0_4 = arith.constant 0 : index
    %c0_5 = arith.constant 0 : index
    %c0_6 = arith.constant 0 : index
    %4 = vector.load %arg3[%c0_4, %c0_5, %c0_6] : memref<8x16x16xf32, #tpu.memory_space<vmem>>, vector<1x16x16xf32>
    %5 = vector.shape_cast %4 : vector<1x16x16xf32> to vector<16x16xf32>
    %6 = vector.shape_cast %3 : vector<16x16xf32> to vector<1x16x16xf32>
    tpu.vector_store %arg3[%c0_4, %c0_5, %c0_6], %6 {strides = array<i32>} : memref<8x16x16xf32, #tpu.memory_space<vmem>>, vector<1x16x16xf32>,
    %c1 = arith.constant 1 : index
    %c0_7 = arith.constant 0 : index
    %c0_8 = arith.constant 0 : index
    %7 = vector.load %arg2[%c1, %c0_7, %c0_8] : memref<8x16x16xf32, #tpu.memory_space<vmem>>, vector<1x16x16xf32>
    %8 = vector.shape_cast %7 : vector<1x16x16xf32> to vector<16x16xf32>
    %cst_9 = arith.constant dense<0.000000e+00> : vector<16x16xf32>
    %9 = tpu.matmul %0, %8, %cst_9 {dimension_numbers = #tpu.dot_dimension_numbers<[1], [0], [0], [1], [0, 0, 1, 1], [], []>} : vector<16x16xf32>, vector<16x16xf32>, vector<16x16xf32> -> vector<16x16xf32>
    %c1_10 = arith.constant 1 : index
    %c0_11 = arith.constant 0 : index
    %c0_12 = arith.constant 0 : index
    %10 = vector.load %arg3[%c1_10, %c0_11, %c0_12] : memref<8x16x16xf32, #tpu.memory_space<vmem>>, vector<1x16x16xf32>
    %11 = vector.shape_cast %10 : vector<1x16x16xf32> to vector<16x16xf32>
    %12 = vector.shape_cast %9 : vector<16x16xf32> to vector<1x16x16xf32>
    tpu.vector_store %arg3[%c1_10, %c0_11, %c0_12], %12 {strides = array<i32>} : memref<8x16x16xf32, #tpu.memory_space<vmem>>, vector<1x16x16xf32>,
    %c2 = arith.constant 2 : index
    %c0_13 = arith.constant 0 : index
    %c0_14 = arith.constant 0 : index
    %13 = vector.load %arg2[%c2, %c0_13, %c0_14] : memref<8x16x16xf32, #tpu.memory_space<vmem>>, vector<1x16x16xf32>
    %14 = vector.shape_cast %13 : vector<1x16x16xf32> to vector<16x16xf32>
    %cst_15 = arith.constant dense<0.000000e+00> : vector<16x16xf32>
    %15 = tpu.matmul %0, %14, %cst_15 {dimension_numbers = #tpu.dot_dimension_numbers<[1], [0], [0], [1], [0, 0, 1, 1], [], []>} : vector<16x16xf32>, vector<16x16xf32>, vector<16x16xf32> -> vector<16x16xf32>
    %c2_16 = arith.constant 2 : index
    %c0_17 = arith.constant 0 : index
    %c0_18 = arith.constant 0 : index
    %16 = vector.load %arg3[%c2_16, %c0_17, %c0_18] : memref<8x16x16xf32, #tpu.memory_space<vmem>>, vector<1x16x16xf32>
    %17 = vector.shape_cast %16 : vector<1x16x16xf32> to vector<16x16xf32>
    %18 = vector.shape_cast %15 : vector<16x16xf32> to vector<1x16x16xf32>
    tpu.vector_store %arg3[%c2_16, %c0_17, %c0_18], %18 {strides = array<i32>} : memref<8x16x16xf32, #tpu.memory_space<vmem>>, vector<1x16x16xf32>,
    %c3 = arith.constant 3 : index
    %c0_19 = arith.constant 0 : index
    %c0_20 = arith.constant 0 : index
    %19 = vector.load %arg2[%c3, %c0_19, %c0_20] : memref<8x16x16xf32, #tpu.memory_space<vmem>>, vector<1x16x16xf32>
    %20 = vector.shape_cast %19 : vector<1x16x16xf32> to vector<16x16xf32>
    %cst_21 = arith.constant dense<0.000000e+00> : vector<16x16xf32>
    %21 = tpu.matmul %0, %20, %cst_21 {dimension_numbers = #tpu.dot_dimension_numbers<[1], [0], [0], [1], [0, 0, 1, 1], [], []>} : vector<16x16xf32>, vector<16x16xf32>, vector<16x16xf32> -> vector<16x16xf32>
    %c3_22 = arith.constant 3 : index
    %c0_23 = arith.constant 0 : index
    %c0_24 = arith.constant 0 : index
    %22 = vector.load %arg3[%c3_22, %c0_23, %c0_24] : memref<8x16x16xf32, #tpu.memory_space<vmem>>, vector<1x16x16xf32>
    %23 = vector.shape_cast %22 : vector<1x16x16xf32> to vector<16x16xf32>
    %24 = vector.shape_cast %21 : vector<16x16xf32> to vector<1x16x16xf32>
    tpu.vector_store %arg3[%c3_22, %c0_23, %c0_24], %24 {strides = array<i32>} : memref<8x16x16xf32, #tpu.memory_space<vmem>>, vector<1x16x16xf32>,
    %c4 = arith.constant 4 : index
    %c0_25 = arith.constant 0 : index
    %c0_26 = arith.constant 0 : index
    %25 = vector.load %arg2[%c4, %c0_25, %c0_26] : memref<8x16x16xf32, #tpu.memory_space<vmem>>, vector<1x16x16xf32>
    %26 = vector.shape_cast %25 : vector<1x16x16xf32> to vector<16x16xf32>
    %cst_27 = arith.constant dense<0.000000e+00> : vector<16x16xf32>
    %27 = tpu.matmul %0, %26, %cst_27 {dimension_numbers = #tpu.dot_dimension_numbers<[1], [0], [0], [1], [0, 0, 1, 1], [], []>} : vector<16x16xf32>, vector<16x16xf32>, vector<16x16xf32> -> vector<16x16xf32>
    %c4_28 = arith.constant 4 : index
    %c0_29 = arith.constant 0 : index
    %c0_30 = arith.constant 0 : index
    %28 = vector.load %arg3[%c4_28, %c0_29, %c0_30] : memref<8x16x16xf32, #tpu.memory_space<vmem>>, vector<1x16x16xf32>
    %29 = vector.shape_cast %28 : vector<1x16x16xf32> to vector<16x16xf32>
    %30 = vector.shape_cast %27 : vector<16x16xf32> to vector<1x16x16xf32>
    tpu.vector_store %arg3[%c4_28, %c0_29, %c0_30], %30 {strides = array<i32>} : memref<8x16x16xf32, #tpu.memory_space<vmem>>, vector<1x16x16xf32>,
    %c5 = arith.constant 5 : index
    %c0_31 = arith.constant 0 : index
    %c0_32 = arith.constant 0 : index
    %31 = vector.load %arg2[%c5, %c0_31, %c0_32] : memref<8x16x16xf32, #tpu.memory_space<vmem>>, vector<1x16x16xf32>
    %32 = vector.shape_cast %31 : vector<1x16x16xf32> to vector<16x16xf32>
    %cst_33 = arith.constant dense<0.000000e+00> : vector<16x16xf32>
    %33 = tpu.matmul %0, %32, %cst_33 {dimension_numbers = #tpu.dot_dimension_numbers<[1], [0], [0], [1], [0, 0, 1, 1], [], []>} : vector<16x16xf32>, vector<16x16xf32>, vector<16x16xf32> -> vector<16x16xf32>
    %c5_34 = arith.constant 5 : index
    %c0_35 = arith.constant 0 : index
    %c0_36 = arith.constant 0 : index
    %34 = vector.load %arg3[%c5_34, %c0_35, %c0_36] : memref<8x16x16xf32, #tpu.memory_space<vmem>>, vector<1x16x16xf32>
    %35 = vector.shape_cast %34 : vector<1x16x16xf32> to vector<16x16xf32>
    %36 = vector.shape_cast %33 : vector<16x16xf32> to vector<1x16x16xf32>
    tpu.vector_store %arg3[%c5_34, %c0_35, %c0_36], %36 {strides = array<i32>} : memref<8x16x16xf32, #tpu.memory_space<vmem>>, vector<1x16x16xf32>,
    %c6 = arith.constant 6 : index
    %c0_37 = arith.constant 0 : index
    %c0_38 = arith.constant 0 : index
    %37 = vector.load %arg2[%c6, %c0_37, %c0_38] : memref<8x16x16xf32, #tpu.memory_space<vmem>>, vector<1x16x16xf32>
    %38 = vector.shape_cast %37 : vector<1x16x16xf32> to vector<16x16xf32>
    %cst_39 = arith.constant dense<0.000000e+00> : vector<16x16xf32>
    %39 = tpu.matmul %0, %38, %cst_39 {dimension_numbers = #tpu.dot_dimension_numbers<[1], [0], [0], [1], [0, 0, 1, 1], [], []>} : vector<16x16xf32>, vector<16x16xf32>, vector<16x16xf32> -> vector<16x16xf32>
    %c6_40 = arith.constant 6 : index
    %c0_41 = arith.constant 0 : index
    %c0_42 = arith.constant 0 : index
    %40 = vector.load %arg3[%c6_40, %c0_41, %c0_42] : memref<8x16x16xf32, #tpu.memory_space<vmem>>, vector<1x16x16xf32>
    %41 = vector.shape_cast %40 : vector<1x16x16xf32> to vector<16x16xf32>
    %42 = vector.shape_cast %39 : vector<16x16xf32> to vector<1x16x16xf32>
    tpu.vector_store %arg3[%c6_40, %c0_41, %c0_42], %42 {strides = array<i32>} : memref<8x16x16xf32, #tpu.memory_space<vmem>>, vector<1x16x16xf32>,
    %c7 = arith.constant 7 : index
    %c0_43 = arith.constant 0 : index
    %c0_44 = arith.constant 0 : index
    %43 = vector.load %arg2[%c7, %c0_43, %c0_44] : memref<8x16x16xf32, #tpu.memory_space<vmem>>, vector<1x16x16xf32>
    %44 = vector.shape_cast %43 : vector<1x16x16xf32> to vector<16x16xf32>
    %cst_45 = arith.constant dense<0.000000e+00> : vector<16x16xf32>
    %45 = tpu.matmul %0, %44, %cst_45 {dimension_numbers = #tpu.dot_dimension_numbers<[1], [0], [0], [1], [0, 0, 1, 1], [], []>} : vector<16x16xf32>, vector<16x16xf32>, vector<16x16xf32> -> vector<16x16xf32>
    %c7_46 = arith.constant 7 : index
    %c0_47 = arith.constant 0 : index
    %c0_48 = arith.constant 0 : index
    %46 = vector.load %arg3[%c7_46, %c0_47, %c0_48] : memref<8x16x16xf32, #tpu.memory_space<vmem>>, vector<1x16x16xf32>
    %47 = vector.shape_cast %46 : vector<1x16x16xf32> to vector<16x16xf32>
    %48 = vector.shape_cast %45 : vector<16x16xf32> to vector<1x16x16xf32>
    tpu.vector_store %arg3[%c7_46, %c0_47, %c0_48], %48 {strides = array<i32>} : memref<8x16x16xf32, #tpu.memory_space<vmem>>, vector<1x16x16xf32>,
    return
  }
  func.func @transform_0(%arg0: i32) -> (i32, i32) {
    %c0_i32 = arith.constant 0 : i32
    %c0_i32_0 = arith.constant 0 : i32
    %c0_i32_1 = arith.constant 0 : i32
    return %c0_i32, %c0_i32_0 : i32, i32
  }
  func.func @transform_1(%arg0: i32) -> (i32, i32, i32) {
    %c0_i32 = arith.constant 0 : i32
    %c0_i32_0 = arith.constant 0 : i32
    %c0_i32_1 = arith.constant 0 : i32
    return %arg0, %c0_i32, %c0_i32_0 : i32, i32, i32
  }
  func.func @transform_2(%arg0: i32) -> (i32, i32, i32) {
    %c0_i32 = arith.constant 0 : i32
    %c0_i32_0 = arith.constant 0 : i32
    %c0_i32_1 = arith.constant 0 : i32
    return %arg0, %c0_i32, %c0_i32_0 : i32, i32, i32
  }
}

</mosaic_0001>

<bundles_post_ra>
// kernel: learnable_filter_forward.1
= control target key start
LH: loop header
LB: loop body
LE: loop exit
PB: predicated region body
PF: predicated region fallthrough
CT: control target
= control target key end

     0   :  { %vm16_vm0 = vcmask 130048   ;;  %s976_s0 = inlined_call_operand.vmem [shape: f32[16,16], index: 0, kind: input, shape index: {}]   ;;  %s977_s1 = inlined_call_operand.vmem [shape: f32[8,16,16], index: 1, kind: input, shape index: {}]   ;;  %s978_s2 = inlined_call_operand.hbm [shape: f32[8,16,16], index: 2, kind: output, shape index: {}]  }
   0x1   :  { %v14_v0 = vld [vmem:[%s977_s1] sm:$0xff]  ;;  %v15_v1 = vld [vmem:[%s977_s1 + $0x8] sm:$0xff]  ;;  %v685_v2 = vld [vmem:[%s977_s1 + $0x10] sm:$0xff] }
   0x2   :  { %v801_v3 = vpack.c.bf16 %v15_v1, %v14_v0  ;;  %v686_v4 = vld [vmem:[%s977_s1 + $0x18] sm:$0xff]  ;;  %v12_v5 = vld [vmem:[%s976_s0] sm:$0xff]  ;;  %v690_v8 = vld [vmem:[%s977_s1 + $0x28] sm:$0xff] }
   0x3   :  { %v805_v6 = vpack.c.bf16 %v686_v4, %v685_v2  ;;  %749 = vmatprep.mubr.msk.f32.mxu0 %vm16_vm0, %v12_v5  ;;  %756 = vmatprep.mubr.msk.f32.mxu1 %vm16_vm0, %v12_v5  ;;  %v689_v7 = vld [vmem:[%s977_s1 + $0x20] sm:$0xff]  ;;  %v693_v9 = vld [vmem:[%s977_s1 + $0x30] sm:$0xff]  ;;  %v694_v11 = vld [vmem:[%s977_s1 + $0x38] sm:$0xff] }
   0x4   :  { %802 = vmatprep.subr.bf16.mxu0 %v801_v3  ;;  %v809_v10 = vpack.c.bf16 %v690_v8, %v689_v7  ;;  %v697_v12 = vld [vmem:[%s977_s1 + $0x40] sm:$0xff]  ;;  %v698_v13 = vld [vmem:[%s977_s1 + $0x48] sm:$0xff]  ;;  %v813_v15 = vpack.c.bf16 %v694_v11, %v693_v9  ;;  %v701_v16 = vld [vmem:[%s977_s1 + $0x50] sm:$0xff] }
   0x5   :  { %806 = vmatprep.subr.bf16.mxu1 %v805_v6  ;;  %804 = vmatpush3.bf16.msra.mxu0 %v801_v3  ;;  %v13_v14 = vld [vmem:[%s976_s0 + $0x8] sm:$0xff]  ;;  %v702_v17 = vld [vmem:[%s977_s1 + $0x58] sm:$0xff]  ;;  %v817_v18 = vpack.c.bf16 %v698_v13, %v697_v12 }
   0x6   :  { %808 = vmatpush3.bf16.msra.mxu1 %v805_v6  ;;  %810 = vmatprep.subr.bf16.mxu0 %v809_v10 }
   0x7   :  { %814 = vmatprep.subr.bf16.mxu1 %v813_v15 }
   0x8   :  { %7 = vsyncpa [#allocation3], 0  ;;  %750 = vmatmul.mubr.msk.f32.vlgmr.msra.gmra.mrb[0].mxu0 %vm16_vm0, %v13_v14  ;;  %v821_v19 = vpack.c.bf16 %v702_v17, %v701_v16  ;;  %v705_v20 = vld [vmem:[%s977_s1 + $0x60] sm:$0xff]  ;;  %v706_v21 = vld [vmem:[%s977_s1 + $0x68] sm:$0xff] }
   0x9   :  { %757 = vmatmul.mubr.msk.f32.vlgmr.msra.gmra.mrb[0].mxu1 %vm16_vm0, %v13_v14  ;;  %812 = vmatpush3.bf16.msra.mxu0 %v809_v10  ;;  %v709_v22 = vld [vmem:[%s977_s1 + $0x70] sm:$0xff]  ;;  %v710_v23 = vld [vmem:[%s977_s1 + $0x78] sm:$0xff]  ;;  %v825_v24 = vpack.c.bf16 %v706_v21, %v705_v20  ;;  %s860_s1 = smov [#allocation2]  }
   0xa   :  { %816 = vmatpush3.bf16.msra.mxu1 %v813_v15  ;;  %763 = vmatprep.mubr.msk.f32.mxu0 %vm16_vm0, %v12_v5  ;;  %v829_v25 = vpack.c.bf16 %v710_v23, %v709_v22  ;;  %s672_s16 = sshll.u32 %s860_s1, 4  ;;  %s673_s16 = int_to_ptr.vmem [resolvable:$true] %s672_s16 }
   0xb   :  { %770 = vmatprep.mubr.msk.f32.mxu1 %vm16_vm0, %v12_v5  ;;  %818 = vmatprep.subr.bf16.mxu0 %v817_v18  ;;  %s836_s17 = scalar_lea.vmem %s673_s16, 2048  ;;  %p841_p1 = scmp.lt.s32.totalorder %s673_s16, %s673_s16 }
   0xc   :  { %764 = vmatmul.mubr.msk.f32.vlgmr.msra.gmra.mrb[2].mxu0 %vm16_vm0, %v13_v14  ;;  %822 = vmatprep.subr.bf16.mxu1 %v821_v19  ;;  %p837_p0 = scmp.ne.s32.totalorder %s673_s16, %s836_s17  ;;  %p842_p2 = scmp.lt.s32.totalorder %s836_s17, %s836_s17 }
   0xd   :  { %771 = vmatmul.mubr.msk.f32.vlgmr.msra.gmra.mrb[2].mxu1 %vm16_vm0, %v13_v14  ;;  %820 = vmatpush3.bf16.msra.mxu0 %v817_v18 }
   0xe   :  { %824 = vmatpush3.bf16.msra.mxu1 %v821_v19  ;;  %777 = vmatprep.mubr.msk.f32.mxu0 %vm16_vm0, %v12_v5  ;;  %p843_p3 = por %p842_p2, %p841_p1 }
   0xf   :  { %784 = vmatprep.mubr.msk.f32.mxu1 %vm16_vm0, %v12_v5  ;;  %826 = vmatprep.subr.bf16.mxu0 %v825_v24 }
  0x10   :  { %778 = vmatmul.mubr.msk.f32.vlgmr.msra.gmra.mrb[4].mxu0 %vm16_vm0, %v13_v14  ;;  %830 = vmatprep.subr.bf16.mxu1 %v829_v25  ;;  %p844_p4 = pnand %p843_p3, %p837_p0 }
  0x11   :  { %785 = vmatmul.mubr.msk.f32.vlgmr.msra.gmra.mrb[4].mxu1 %vm16_vm0, %v13_v14  ;;  %828 = vmatpush3.bf16.msra.mxu0 %v825_v24 }
  0x12   :  { %832 = vmatpush3.bf16.msra.mxu1 %v829_v25  ;;  %791 = vmatprep.mubr.msk.f32.mxu0 %vm16_vm0, %v12_v5 }
  0x13   :  { %798 = vmatprep.mubr.msk.f32.mxu1 %vm16_vm0, %v12_v5 }
  0x14   :  { %792 = vmatmul.mubr.msk.f32.vlgmr.msra.gmra.mrb[6].mxu0 %vm16_vm0, %v13_v14 }
  0x15   :  { %799 = vmatmul.mubr.msk.f32.vlgmr.msra.gmra.mrb[6].mxu1 %vm16_vm0, %v13_v14 }
  0xdb   :  { %v751_v26 = vpop.f32.mrb[0].mxu0 }
  0xdc   :  { %99 = vst.msk [vmem:[#allocation2 + $0x8] sm:$0xff] %vm16_vm0, %v751_v26  ;;  %v758_v27 = vpop.f32.mrb[0].mxu1  ;;  %v89_v28 = vpop.f32.mrb[1].mxu0 }
  0xdd   :  { %180 = vst.msk [vmem:[#allocation2 + $0x18] sm:$0xff] %vm16_vm0, %v758_v27  ;;  %98 = vst.msk [vmem:[#allocation2] sm:$0xff] %vm16_vm0, %v89_v28  ;;  %v169_v29 = vpop.f32.mrb[1].mxu1 }
  0xde   :  { %179 = vst.msk [vmem:[#allocation2 + $0x10] sm:$0xff] %vm16_vm0, %v169_v29 }
  0xdf   :  { %v765_v30 = vpop.f32.mrb[2].mxu0 }
  0xe0   :  { %261 = vst.msk [vmem:[#allocation2 + $0x28] sm:$0xff] %vm16_vm0, %v765_v30  ;;  %v772_v31 = vpop.f32.mrb[2].mxu1  ;;  %v250_v32 = vpop.f32.mrb[3].mxu0 }
  0xe1   :  { %342 = vst.msk [vmem:[#allocation2 + $0x38] sm:$0xff] %vm16_vm0, %v772_v31  ;;  %260 = vst.msk [vmem:[#allocation2 + $0x20] sm:$0xff] %vm16_vm0, %v250_v32  ;;  %v331_v33 = vpop.f32.mrb[3].mxu1 }
  0xe2   :  { %341 = vst.msk [vmem:[#allocation2 + $0x30] sm:$0xff] %vm16_vm0, %v331_v33 }
  0xe3   :  { %v779_v34 = vpop.f32.mrb[4].mxu0 }
  0xe4   :  { %423 = vst.msk [vmem:[#allocation2 + $0x48] sm:$0xff] %vm16_vm0, %v779_v34  ;;  %v786_v35 = vpop.f32.mrb[4].mxu1  ;;  %v412_v36 = vpop.f32.mrb[5].mxu0 }
  0xe5   :  { %504 = vst.msk [vmem:[#allocation2 + $0x58] sm:$0xff] %vm16_vm0, %v786_v35  ;;  %422 = vst.msk [vmem:[#allocation2 + $0x40] sm:$0xff] %vm16_vm0, %v412_v36  ;;  %v493_v37 = vpop.f32.mrb[5].mxu1 }
  0xe6   :  { %503 = vst.msk [vmem:[#allocation2 + $0x50] sm:$0xff] %vm16_vm0, %v493_v37 }
  0xe7   :  { %v793_v38 = vpop.f32.mrb[6].mxu0 }
  0xe8   :  { %585 = vst.msk [vmem:[#allocation2 + $0x68] sm:$0xff] %vm16_vm0, %v793_v38  ;;  %v800_v39 = vpop.f32.mrb[6].mxu1  ;;  %v574_v40 = vpop.f32.mrb[7].mxu0 }
  0xe9   :  { %666 = vst.msk [vmem:[#allocation2 + $0x78] sm:$0xff] %vm16_vm0, %v800_v39  ;;  %584 = vst.msk [vmem:[#allocation2 + $0x60] sm:$0xff] %vm16_vm0, %v574_v40  ;;  %v655_v41 = vpop.f32.mrb[7].mxu1 }
  0xea   :  { %665 = vst.msk [vmem:[#allocation2 + $0x70] sm:$0xff] %vm16_vm0, %v655_v41 }
  0xeb   :  { %847 = shalt.err (!%p844_p4)
}
  0xec   :  { %s848_s20 = scalar_lea.hbm %s978_s2, 2048 }
  0xed   :  { %p849_p5 = scmp.ne.s32.totalorder %s978_s2, %s848_s20  ;;  %p852_p6 = scmp.lt.u32.totalorder %s848_s20, %s978_s2 }
  0xef   :  { %p854_p7 = pnand %p852_p6, %p849_p5 }
  0xf1   :  { %857 = shalt.err (!%p854_p7)
}
  0xf2   :  { %s861_s25 = smov 128   ;;  %s862_s26 = smov 8  }
  0xf3   :  { %678 = dma.vmem_to_hbm [thread:$0]  %s673_s16, 2048, %s978_s2, [#allocation3], %s861_s25, %s861_s25, %s862_s26  }
  0xf4   :  { %858 = dma.done.wait [#allocation3], 2048  }
  0xf5   :  { %859 = vsyncadd [#allocation3], 4294965248 }
  0xf6   :  { %682 = vsyncpa [#allocation3], 1 }

</bundles_post_ra>
